<compile_context>
chip_gen: v6e
topology: v6e:2x2x1
jax: 0.10.0
libtpu: 0.0.40
codegen_flags: <defaults>
</compile_context>

<pallas_src>
import math

import jax
import jax.numpy as jnp
from jax.experimental import pallas as pl
from jax.experimental.pallas import tpu as pltpu


# ---------------------------------------------------------------------------
# Small helpers
# ---------------------------------------------------------------------------
def _round_up(x, m):
    return ((x + m - 1) // m) * m


def _pick_tile(n, cap):
    """Return (tile, padded_n) with tile <= cap and tile | padded_n."""
    if n <= cap:
        return n, n                      # single full-extent block, no padding
    for t in (1024, 512, 256, 128, 64):  # prefer large divisor tiles (no pad)
        if t <= cap and n % t == 0:
            return t, n
    t = max(8, (min(cap, 512) // 8) * 8)  # otherwise keep a big tile and pad
    return (t, n) if n % t == 0 else (t, _round_up(n, t))


def _fused_footprint_bytes(n, h):
    """Rough VMEM footprint of the fused two-layer kernel (single grid point)."""
    return (n * n * 2          # A (bf16), resident
            + n * h * 2        # ZW1 (bf16)
            + h * h * 2        # W2 (bf16)
            + 2 * n * h * 4    # h1, h2 f32 outputs
            + 4 * n * h * 4)   # in-kernel temporaries (headroom)


# ---------------------------------------------------------------------------
# Fused path: both GCN layers in one pallas_call, A read from HBM once.
# ---------------------------------------------------------------------------
def _fused_two_layer(a_b, zw1_b, w2_b):
    """h1 = relu(A @ ZW1); h2 = relu(A @ bf16(bf16(h1) @ W2)).  A resident."""
    n = a_b.shape[0]
    h = w2_b.shape[1]

    def kernel(a_ref, zw1_ref, w2_ref, h1_ref, h2_ref):
        a = a_ref[...]
        h1 = jnp.maximum(
            jnp.dot(a, zw1_ref[...], preferred_element_type=jnp.float32), 0.0)
        h1_ref[...] = h1
        zw2 = jnp.dot(h1.astype(jnp.bfloat16), w2_ref[...],
                      preferred_element_type=jnp.float32).astype(jnp.bfloat16)
        h2_ref[...] = jnp.maximum(
            jnp.dot(a, zw2, preferred_element_type=jnp.float32), 0.0)

    footprint = _fused_footprint_bytes(n, h)
    vmem_limit = int(min(64 << 20, max(32 << 20, 2 * footprint + (8 << 20))))

    h1, h2 = pl.pallas_call(
        kernel,
        out_shape=(jax.ShapeDtypeStruct((n, h), jnp.float32),
                   jax.ShapeDtypeStruct((n, h), jnp.float32)),
        grid=(1,),
        in_specs=[
            pl.BlockSpec((n, n), lambda i: (0, 0)),   # A resident
            pl.BlockSpec((n, h), lambda i: (0, 0)),   # ZW1
            pl.BlockSpec((h, h), lambda i: (0, 0)),   # W2
        ],
        out_specs=(pl.BlockSpec((n, h), lambda i: (0, 0)),
                   pl.BlockSpec((n, h), lambda i: (0, 0))),
        compiler_params=pltpu.CompilerParams(
            dimension_semantics=("arbitrary",),
            vmem_limit_bytes=vmem_limit),
    )(a_b, zw1_b, w2_b)
    return h1, h2


# ---------------------------------------------------------------------------
# Tiled path: one GCN layer as relu(A @ ZW), row x contraction tiled.
# ---------------------------------------------------------------------------
def _axw_relu_tiled(a_b, zw_b, *, out_dtypes, max_row_tile, max_k_tile):
    """Return [relu(A @ ZW).astype(d) for d in out_dtypes] (each (N, H))."""
    n, k_dim = a_b.shape
    h = zw_b.shape[1]

    # Lane-dense stores: pad output width to a full 128-lane group (zeros only;
    # numerically a no-op), slice it back off below.
    h_pad = _round_up(h, 128) if h % 128 else h
    if h_pad != h:
        zw_b = jnp.pad(zw_b, ((0, 0), (0, h_pad - h)))

    # >= 2 row tiles where possible so both v7x TensorCores get work.
    tm_cap = min(max_row_tile, max(8, _round_up((n + 1) // 2, 8)))
    tm, n_rows = _pick_tile(n, tm_cap)
    tk, n_k = _pick_tile(k_dim, max_k_tile)

    if n_rows != n or n_k != k_dim:
        a_b = jnp.pad(a_b, ((0, n_rows - n), (0, n_k - k_dim)))
    if n_k != k_dim:
        zw_b = jnp.pad(zw_b, ((0, n_k - k_dim), (0, 0)))

    grid = (n_rows // tm, n_k // tk)
    out_bytes = sum(jnp.dtype(d).itemsize for d in out_dtypes)
    footprint = (2 * tm * tk * 2            # A tile, double-buffered, bf16
                 + 2 * tk * h_pad * 2       # ZW tile, double-buffered, bf16
                 + 2 * tm * h_pad * out_bytes   # output tiles, double-buffered
                 + tm * h_pad * 4)          # f32 accumulator scratch
    vmem_limit = int(min(64 << 20, max(32 << 20, 2 * footprint + (8 << 20))))

    def kernel(a_ref, zw_ref, *rest):
        acc_ref = rest[-1]
        out_refs = rest[:-1]
        k = pl.program_id(1)

        @pl.when(k == 0)
        def _():
            acc_ref[...] = jnp.zeros_like(acc_ref)

        acc_ref[...] += jnp.dot(a_ref[...], zw_ref[...],
                                preferred_element_type=jnp.float32)

        @pl.when(k == pl.num_programs(1) - 1)
        def _():
            hidden = jnp.maximum(acc_ref[...], 0.0)
            for o in out_refs:
                o[...] = hidden.astype(o.dtype)

    outs = pl.pallas_call(
        kernel,
        out_shape=tuple(jax.ShapeDtypeStruct((n_rows, h_pad), d)
                        for d in out_dtypes),
        grid=grid,
        in_specs=[
            pl.BlockSpec((tm, tk), lambda i, k: (i, k)),     # A tile
            pl.BlockSpec((tk, h_pad), lambda i, k: (k, 0)),  # ZW tile
        ],
        out_specs=tuple(pl.BlockSpec((tm, h_pad), lambda i, k: (i, 0))
                        for _ in out_dtypes),
        scratch_shapes=[pltpu.VMEM((tm, h_pad), jnp.float32)],
        compiler_params=pltpu.CompilerParams(
            dimension_semantics=("parallel", "arbitrary"),
            vmem_limit_bytes=vmem_limit),
    )(a_b, zw_b)

    outs = outs if isinstance(outs, (tuple, list)) else (outs,)
    return tuple(o[:n, :h] for o in outs)   # drop row / lane padding


# ---------------------------------------------------------------------------
# Full model forward
# ---------------------------------------------------------------------------
def gcn_model_forward(features, adjacency, w1, w2, *,
                      max_row_tile=512, max_k_tile=1024,
                      fuse_vmem_budget_bytes=20 << 20):
    """2-layer GCN forward (inference path), bf16 MXU operands / f32 accum."""
    n, f = features.shape
    h = w1.shape[1]
    assert adjacency.shape == (n, n)
    assert w1.shape == (f, h) and w2.shape == (h, h)

    a_b = adjacency.astype(jnp.bfloat16)
    w1_b = w1.astype(jnp.bfloat16)
    w2_b = w2.astype(jnp.bfloat16)

    # ZW1 = X @ W1 precomputed once (O(N*F*H) << O(N^2*H) A-matmuls), so each
    # A tile needs a single MXU matmul and no large-accumulator bf16 rounding.
    zw1_b = jnp.dot(features.astype(jnp.bfloat16), w1_b,
                    preferred_element_type=jnp.float32).astype(jnp.bfloat16)

    if _fused_footprint_bytes(n, h) <= fuse_vmem_budget_bytes:
        # A fits in VMEM (with headroom for v7x's 64 MiB/core): read A once,
        # keep both layers and the h1 handoff on-chip.
        h1, h2 = _fused_two_layer(a_b, zw1_b, w2_b)
    else:
        # Large graphs: stream A twice through the tiled kernel.  Layer 1
        # emits h1 both in f32 (for the concat) and bf16 (for the layer-2
        # handoff), avoiding an extra wrapper-side cast pass over h1.
        h1, h1_b = _axw_relu_tiled(
            a_b, zw1_b, out_dtypes=(jnp.float32, jnp.bfloat16),
            max_row_tile=max_row_tile, max_k_tile=max_k_tile)
        zw2_b = jnp.dot(h1_b, w2_b,
                        preferred_element_type=jnp.float32).astype(jnp.bfloat16)
        (h2,) = _axw_relu_tiled(
            a_b, zw2_b, out_dtypes=(jnp.float32,),
            max_row_tile=max_row_tile, max_k_tile=max_k_tile)

    # Concat in the wrapper: kernels always store lane-dense full-width blocks.
    return jnp.concatenate([h1, h2], axis=1)


# ---------------------------------------------------------------------------
# References
# ---------------------------------------------------------------------------
def xavier_uniform(key, fan_in, fan_out, dtype=jnp.float32):
    """Matches torch.nn.init.xavier_uniform_ (gain=1)."""
    bound = math.sqrt(6.0 / (fan_in + fan_out))
    return jax.random.uniform(key, (fan_in, fan_out), dtype=dtype,
                              minval=-bound, maxval=bound)


def gcn_reference_f32(features, adjacency, w1, w2):
    """Exact f32 reference with the original module's association."""
    hp = jax.lax.Precision.HIGHEST
    h1 = jnp.maximum(jnp.dot(adjacency, jnp.dot(features, w1, precision=hp),
                             precision=hp), 0.0)
    h2 = jnp.maximum(jnp.dot(adjacency, jnp.dot(h1, w2, precision=hp),
                             precision=hp), 0.0)
    return jnp.concatenate([h1, h2], axis=1)


def gcn_reference_matched(features, adjacency, w1, w2):
    """Pure-JAX reference mirroring the kernel's exact bf16 rounding points."""
    f32 = jnp.float32
    hp = jax.lax.Precision.HIGHEST
    rb = lambda x: x.astype(jnp.bfloat16).astype(f32)

    a = rb(adjacency)
    x = rb(features)
    w1b, w2b = rb(w1), rb(w2)

    zw1 = rb(jnp.dot(x, w1b, precision=hp))
    h1 = jnp.maximum(jnp.dot(a, zw1, precision=hp), 0.0)        # f32 (concat)
    zw2 = rb(jnp.dot(rb(h1), w2b, precision=hp))                # bf16 handoff
    h2 = jnp.maximum(jnp.dot(a, zw2, precision=hp), 0.0)
    return jnp.concatenate([h1, h2], axis=1)


# ---------------------------------------------------------------------------
# Demo / correctness checks
# ---------------------------------------------------------------------------
if __name__ == "__main__":
    key = jax.random.PRNGKey(0)
    k_x, k_a, k_w1, k_w2, k_x2, k_a2 = jax.random.split(key, 6)

    # Toy shape consistent with the module: N=16 nodes, node_features_dim=8,
    # hidden_dim=32, num_layers=2  ->  fused (A-resident) path.
    N, F, H = 16, 8, 32
    features = jax.random.normal(k_x, (N, F), dtype=jnp.float32)
    adjacency = jax.random.uniform(k_a, (N, N), dtype=jnp.float32)
    w1 = xavier_uniform(k_w1, F, H)   # layer 0: (node_features_dim, hidden_dim)
    w2 = xavier_uniform(k_w2, H, H)   # layer 1: (hidden_dim, hidden_dim)

    y = jax.block_until_ready(gcn_model_forward(features, adjacency, w1, w2))
    assert y.shape == (N, 2 * H)

    # Tight check against a reference with identical bf16 rounding points.
    y_matched = gcn_reference_matched(features, adjacency, w1, w2)
    assert jnp.allclose(y, y_matched, atol=2e-3, rtol=2e-3), \
        "mismatch vs bf16-matched reference (fused path)"

    # Coarse sanity check vs the exact-f32 original-association reference;
    # differences are purely the bf16 inference-precision quantization.
    y_f32 = gcn_reference_f32(features, adjacency, w1, w2)
    assert jnp.allclose(y, y_f32, atol=5e-1, rtol=1e-1), \
        "mismatch vs f32 reference beyond bf16 quantization tolerance"

    # Larger shape forced down the tiled (streaming-A) path so the row x
    # contraction accumulator kernel is exercised too (4x4 grid of 128 tiles).
    N2 = 512
    features2 = jax.random.normal(k_x2, (N2, F), dtype=jnp.float32)
    adjacency2 = jax.random.uniform(k_a2, (N2, N2), dtype=jnp.float32)
    y2 = jax.block_until_ready(
        gcn_model_forward(features2, adjacency2, w1, w2,
                          max_row_tile=128, max_k_tile=128,
                          fuse_vmem_budget_bytes=0))
    assert y2.shape == (N2, 2 * H)
    y2_matched = gcn_reference_matched(features2, adjacency2, w1, w2)
    assert jnp.allclose(y2, y2_matched, atol=2e-2, rtol=2e-3), \
        "mismatch vs bf16-matched reference (tiled path)"

    print("KERNEL_OK")
</pallas_src>

<mosaic_0001>
module attributes {stable_mosaic.version = 11 : i64} {
  func.func @kernel(%arg0: i32, %arg1: memref<16x16xbf16, #tpu.memory_space<vmem>>, %arg2: memref<16x32xbf16, #tpu.memory_space<vmem>>, %arg3: memref<32x32xbf16, #tpu.memory_space<vmem>>, %arg4: memref<16x32xf32, #tpu.memory_space<vmem>>, %arg5: memref<16x32xf32, #tpu.memory_space<vmem>>) attributes {dimension_semantics = [#tpu.dimension_semantics<arbitrary>], iteration_bounds = array<i64: 1>, scalar_prefetch = 0 : i64, scratch_operands = 0 : i64, tpu.core_type = #tpu.core_type<tc>, window_params = [{pipeline_mode = #tpu.pipeline_mode<synchronous>, transform_indices = @transform_0, window_bounds = array<i64: 16, 16>}, {pipeline_mode = #tpu.pipeline_mode<synchronous>, transform_indices = @transform_1, window_bounds = array<i64: 16, 32>}, {pipeline_mode = #tpu.pipeline_mode<synchronous>, transform_indices = @transform_2, window_bounds = array<i64: 32, 32>}, {pipeline_mode = #tpu.pipeline_mode<synchronous>, transform_indices = @transform_3, window_bounds = array<i64: 16, 32>}, {pipeline_mode = #tpu.pipeline_mode<synchronous>, transform_indices = @transform_4, window_bounds = array<i64: 16, 32>}]} {
    %c0 = arith.constant 0 : index
    %c0_0 = arith.constant 0 : index
    %0 = vector.load %arg1[%c0, %c0_0] : memref<16x16xbf16, #tpu.memory_space<vmem>>, vector<16x16xbf16>
    %c0_1 = arith.constant 0 : index
    %c0_2 = arith.constant 0 : index
    %1 = vector.load %arg2[%c0_1, %c0_2] : memref<16x32xbf16, #tpu.memory_space<vmem>>, vector<16x32xbf16>
    %cst = arith.constant dense<0.000000e+00> : vector<16x32xf32>
    %2 = tpu.matmul %0, %1, %cst {dimension_numbers = #tpu.dot_dimension_numbers<[1], [0], [0], [1], [0, 0, 1, 1], [], []>} : vector<16x16xbf16>, vector<16x32xbf16>, vector<16x32xf32> -> vector<16x32xf32>
    %cst_3 = arith.constant 0.000000e+00 : f32
    %3 = vector.broadcast %cst_3 : f32 to vector<16x32xf32>
    %4 = arith.maximumf %2, %3 : vector<16x32xf32>
    %c0_4 = arith.constant 0 : index
    %c0_5 = arith.constant 0 : index
    %5 = vector.load %arg4[%c0_4, %c0_5] : memref<16x32xf32, #tpu.memory_space<vmem>>, vector<16x32xf32>
    tpu.vector_store %arg4[%c0_4, %c0_5], %4 {strides = array<i32>} : memref<16x32xf32, #tpu.memory_space<vmem>>, vector<16x32xf32>,
    %6 = arith.truncf %4 : vector<16x32xf32> to vector<16x32xbf16>
    %c0_6 = arith.constant 0 : index
    %c0_7 = arith.constant 0 : index
    %7 = vector.load %arg3[%c0_6, %c0_7] : memref<32x32xbf16, #tpu.memory_space<vmem>>, vector<32x32xbf16>
    %cst_8 = arith.constant dense<0.000000e+00> : vector<16x32xf32>
    %8 = tpu.matmul %6, %7, %cst_8 {dimension_numbers = #tpu.dot_dimension_numbers<[1], [0], [0], [1], [0, 0, 1, 1], [], []>} : vector<16x32xbf16>, vector<32x32xbf16>, vector<16x32xf32> -> vector<16x32xf32>
    %9 = arith.truncf %8 : vector<16x32xf32> to vector<16x32xbf16>
    %cst_9 = arith.constant dense<0.000000e+00> : vector<16x32xf32>
    %10 = tpu.matmul %0, %9, %cst_9 {dimension_numbers = #tpu.dot_dimension_numbers<[1], [0], [0], [1], [0, 0, 1, 1], [], []>} : vector<16x16xbf16>, vector<16x32xbf16>, vector<16x32xf32> -> vector<16x32xf32>
    %cst_10 = arith.constant 0.000000e+00 : f32
    %11 = vector.broadcast %cst_10 : f32 to vector<16x32xf32>
    %12 = arith.maximumf %10, %11 : vector<16x32xf32>
    %c0_11 = arith.constant 0 : index
    %c0_12 = arith.constant 0 : index
    %13 = vector.load %arg5[%c0_11, %c0_12] : memref<16x32xf32, #tpu.memory_space<vmem>>, vector<16x32xf32>
    tpu.vector_store %arg5[%c0_11, %c0_12], %12 {strides = array<i32>} : memref<16x32xf32, #tpu.memory_space<vmem>>, vector<16x32xf32>,
    return
  }
  func.func @transform_0(%arg0: i32) -> (i32, i32) {
    %c0_i32 = arith.constant 0 : i32
    %c0_i32_0 = arith.constant 0 : i32
    %c0_i32_1 = arith.constant 0 : i32
    return %c0_i32, %c0_i32_0 : i32, i32
  }
  func.func @transform_1(%arg0: i32) -> (i32, i32) {
    %c0_i32 = arith.constant 0 : i32
    %c0_i32_0 = arith.constant 0 : i32
    %c0_i32_1 = arith.constant 0 : i32
    return %c0_i32, %c0_i32_0 : i32, i32
  }
  func.func @transform_2(%arg0: i32) -> (i32, i32) {
    %c0_i32 = arith.constant 0 : i32
    %c0_i32_0 = arith.constant 0 : i32
    %c0_i32_1 = arith.constant 0 : i32
    return %c0_i32, %c0_i32_0 : i32, i32
  }
  func.func @transform_3(%arg0: i32) -> (i32, i32) {
    %c0_i32 = arith.constant 0 : i32
    %c0_i32_0 = arith.constant 0 : i32
    %c0_i32_1 = arith.constant 0 : i32
    return %c0_i32, %c0_i32_0 : i32, i32
  }
  func.func @transform_4(%arg0: i32) -> (i32, i32) {
    %c0_i32 = arith.constant 0 : i32
    %c0_i32_0 = arith.constant 0 : i32
    %c0_i32_1 = arith.constant 0 : i32
    return %c0_i32, %c0_i32_0 : i32, i32
  }
}

</mosaic_0001>

<bundles_post_ra>
// kernel: tpu_custom_call.1
= control target key start
LH: loop header
LB: loop body
LE: loop exit
PB: predicated region body
PF: predicated region fallthrough
CT: control target
= control target key end

     0   :  { %10 = vsyncpa [#allocation3], 0  ;;  %s481_s0 = inlined_call_operand.hbm [shape: bf16[16,16], index: 0, kind: input, shape index: {}]   ;;  %s482_s1 = inlined_call_operand.hbm [shape: bf16[16,32], index: 1, kind: input, shape index: {}]   ;;  %s483_s2 = inlined_call_operand.hbm [shape: bf16[32,32], index: 2, kind: input, shape index: {}]   ;;  %s484_s3 = inlined_call_operand.hbm [shape: f32[16,32], index: 3, kind: output, shape index: {0}]   ;;  %s485_s4 = inlined_call_operand.hbm [shape: f32[16,32], index: 4, kind: output, shape index: {1}]  }
   0x1   :  { %11 = vsyncpa [#allocation6], 0 }
   0x2   :  { %12 = vsyncpa [#allocation4], 0 }
   0x3   :  { %13 = vsyncpa [#allocation10], 0  ;;  %s423_s15 = smov [#allocation5]   ;;  %s424_s17 = smov [#allocation2]  }
   0x4   :  { %s31_s16 = sshll.u32 %s423_s15, 4  ;;  %s19_s18 = sshll.u32 %s424_s17, 4  ;;  %s32_s16 = int_to_ptr.vmem [resolvable:$true] %s31_s16  ;;  %s20_s18 = int_to_ptr.vmem [resolvable:$true] %s19_s18 }
   0x5   :  { %s323_s19 = scalar_lea.vmem %s32_s16, 128  ;;  %p328_p1 = scmp.lt.s32.totalorder %s32_s16, %s32_s16 }
   0x6   :  { %p324_p0 = scmp.ne.s32.totalorder %s32_s16, %s323_s19  ;;  %p329_p2 = scmp.lt.s32.totalorder %s323_s19, %s323_s19 }
   0x8   :  { %p330_p3 = por %p329_p2, %p328_p1 }
   0xa   :  { %p331_p4 = pnand %p330_p3, %p324_p0 }
   0xc   :  { %334 = shalt.err (!%p331_p4)
}
   0xd   :  { %s425_s20 = smov 64   ;;  %s426_s21 = smov 4  }
   0xe   :  { %37 = dma.hbm_to_vmem [thread:$0]  %s482_s1, 128, %s32_s16, [#allocation6], %s425_s20, %s425_s20, %s426_s21  }
   0xf   :  { %s343_s24 = scalar_lea.vmem %s20_s18, 128  ;;  %p348_p6 = scmp.lt.s32.totalorder %s20_s18, %s20_s18 }
  0x10   :  { %p344_p5 = scmp.ne.s32.totalorder %s20_s18, %s343_s24  ;;  %p349_p7 = scmp.lt.s32.totalorder %s343_s24, %s343_s24 }
  0x12   :  { %p350_p8 = por %p349_p7, %p348_p6 }
  0x14   :  { %p351_p9 = pnand %p350_p8, %p344_p5 }
  0x16   :  { %354 = shalt.err (!%p351_p9)
}
  0x17   :  { %25 = dma.hbm_to_vmem [thread:$0]  %s481_s0, 128, %s20_s18, [#allocation3], %s425_s20, %s425_s20, %s426_s21  }
  0x18   :  { %s427_s27 = smov [#allocation7]  }
  0x19   :  { %s43_s28 = sshll.u32 %s427_s27, 4  ;;  %s44_s28 = int_to_ptr.vmem [resolvable:$true] %s43_s28 }
  0x1a   :  { %s363_s29 = scalar_lea.vmem %s44_s28, 256  ;;  %p368_p11 = scmp.lt.s32.totalorder %s44_s28, %s44_s28 }
  0x1b   :  { %p364_p10 = scmp.ne.s32.totalorder %s44_s28, %s363_s29  ;;  %p369_p12 = scmp.lt.s32.totalorder %s363_s29, %s363_s29 }
  0x1d   :  { %p370_p13 = por %p369_p12, %p368_p11 }
  0x1f   :  { %p371_p0 = pnand %p370_p13, %p364_p10 }
  0x21   :  { %374 = shalt.err (!%p371_p0)
}
  0x22   :  { %49 = dma.hbm_to_vmem [thread:$0]  %s483_s2, 256, %s44_s28, [#allocation6], %s425_s20, %s425_s20, %s426_s21  }
  0x23   :  { %415 = dma.done.wait [#allocation3], 128  }
  0x24   :  { %416 = vsyncadd [#allocation3], 4294967168 }
  0x25   :  { %417 = dma.done.wait [#allocation6], 384  }
  0x26   :  { %418 = vsyncadd [#allocation6], 4294966912  ;;  %v428_v0 = vmov 0.0   ;;  %vm429_vm0 = vmmov 0   ;;  %v311_v1 = vld [vmem:[#allocation5] sm:$0xff]   ;;  %v312_v2 = vld [vmem:[#allocation2] sm:$0xff]  }
  0x27   :  { %280 = vmatprep.subr.bf16.mxu0 %v428_v0  ;;  %282 = vmatprep.mubr.msk.bf16.mxu0 %vm429_vm0, %v428_v0  ;;  %vm75_vm1 = vcmask 130048   ;;  %v313_v3 = vld [vmem:[#allocation7 + $0x8] sm:$0xff]   ;;  %v314_v4 = vld [vmem:[#allocation7] sm:$0xff]   ;;  %vm122_vm2 = vcmask 261120   ;;  %s430_s0 = smov [#allocation8]  }
  0x28   :  { %286 = vmatprep.subr.bf16.mxu1 %v428_v0  ;;  %290 = vmatprep.mubr.msk.bf16.mxu1 %vm429_vm0, %v428_v0  ;;  %s237_s2 = sshll.u32 %s430_s0, 4  ;;  %s238_s2 = int_to_ptr.vmem [resolvable:$true] %s237_s2 }
  0x29   :  { %281 = vmatpush3.bf16.msra.mxu0 %v311_v1  ;;  %287 = vmatpush3.bf16.msra.mxu1 %v313_v3  ;;  %s375_s5 = scalar_lea.vmem %s238_s2, 256  ;;  %p380_p2 = scmp.lt.s32.totalorder %s238_s2, %s238_s2 }
  0x2a   :  { %294 = vmatprep.subr.bf16.mxu0 %v428_v0  ;;  %288 = vmatprep.subr.bf16.mxu1 %v428_v0  ;;  %p376_p1 = scmp.ne.s32.totalorder %s238_s2, %s375_s5  ;;  %p381_p3 = scmp.lt.s32.totalorder %s375_s5, %s375_s5 }
  0x2c   :  { %283 = vmatmul.mubr.msk.bf16.vlgmr.msra.gmra.mxu0 %vm75_vm1, %v312_v2  ;;  %p382_p4 = por %p381_p3, %p380_p2 }
  0x2d   :  { %296 = vmatprep.mubr.msk.bf16.mxu0 %vm429_vm0, %v428_v0  ;;  %289 = vmatpush3.bf16.msra.mxu1 %v314_v4 }
  0x2e   :  { %p383_p5 = pnand %p382_p4, %p376_p1 }
  0xec   :  { %v113_v5 = vpop.f32.mrf.mxu0 }
  0xed   :  { %v120_v6 = vmax.f32 %v113_v5, 0.0 }
  0xee   :  { %v284_v7 = vpop.f32.mrf.mxu0 }
  0xef   :  { %123 = vst.msk [vmem:[#allocation8] sm:$0xff] %vm122_vm2, %v120_v6 }
  0xf0   :  { %v116_v8 = vpop.f32.mrf.mxu0 }
  0xf1   :  { %v121_v9 = vmax.f32 %v116_v8, 0.0 }
  0xf2   :  { %v285_v10 = vpop.f32.mrf.mxu0 }
  0xf3   :  { %124 = vst.msk [vmem:[#allocation8 + $0x8] sm:$0xff] %vm122_vm2, %v121_v9  ;;  %v125_v11 = vpack.c.bf16 %v121_v9, %v120_v6 }
  0xf5   :  { %291 = vmatmul.mubr.msk.bf16.vlgmr.msra.gmra.mxu1 %vm122_vm2, %v125_v11 }
 0x1b5   :  { %v179_v12 = vpop.f32.mrf.mxu1 }
 0x1b7   :  { %v292_v13 = vpop.f32.mrf.mxu1 }
 0x1b9   :  { %v182_v14 = vpop.f32.mrf.mxu1 }
 0x1ba   :  { %v186_v15 = vpack.c.bf16 %v182_v14, %v179_v12 }
 0x1bb   :  { %v293_v16 = vpop.f32.mrf.mxu1 }
 0x1bc   :  { %295 = vmatpush3.bf16.msra.mxu0 %v186_v15 }
 0x1bf   :  { %297 = vmatmul.mubr.msk.bf16.vlgmr.msra.gmra.mxu0 %vm75_vm1, %v312_v2 }
 0x1c0   :  { %386 = shalt.err (!%p383_p5)
}
 0x1c1   :  { %s431_s6 = smov 128   ;;  %s432_s7 = smov 8  }
 0x1c2   :  { %243 = dma.vmem_to_hbm [thread:$0]  %s238_s2, 256, %s484_s3, [#allocation4], %s431_s6, %s431_s6, %s432_s7  }
 0x1c3   :  { %s433_s10 = smov [#allocation9]  }
 0x1c4   :  { %s249_s11 = sshll.u32 %s433_s10, 4  ;;  %s250_s11 = int_to_ptr.vmem [resolvable:$true] %s249_s11 }
 0x1c5   :  { %s395_s12 = scalar_lea.vmem %s250_s11, 256  ;;  %p400_p7 = scmp.lt.s32.totalorder %s250_s11, %s250_s11 }
 0x1c6   :  { %p396_p6 = scmp.ne.s32.totalorder %s250_s11, %s395_s12  ;;  %p401_p8 = scmp.lt.s32.totalorder %s395_s12, %s395_s12 }
 0x1c8   :  { %p402_p9 = por %p401_p8, %p400_p7 }
 0x1ca   :  { %p403_p10 = pnand %p402_p9, %p396_p6 }
 0x27f   :  { %v221_v17 = vpop.f32.mrf.mxu0 }
 0x280   :  { %v228_v18 = vmax.f32 %v221_v17, 0.0 }
 0x281   :  { %v298_v19 = vpop.f32.mrf.mxu0 }
 0x282   :  { %230 = vst.msk [vmem:[#allocation9] sm:$0xff] %vm122_vm2, %v228_v18 }
 0x283   :  { %v224_v20 = vpop.f32.mrf.mxu0 }
 0x284   :  { %v229_v21 = vmax.f32 %v224_v20, 0.0 }
 0x285   :  { %v299_v22 = vpop.f32.mrf.mxu0 }
 0x286   :  { %231 = vst.msk [vmem:[#allocation9 + $0x8] sm:$0xff] %vm122_vm2, %v229_v21 }
 0x287   :  { %406 = shalt.err (!%p403_p10)
}
 0x288   :  { %255 = dma.vmem_to_hbm [thread:$0]  %s250_s11, 256, %s485_s4, [#allocation10], %s431_s6, %s431_s6, %s432_s7  }
 0x289   :  { %419 = dma.done.wait [#allocation4], 256  }
 0x28a   :  { %420 = vsyncadd [#allocation4], 4294967040 }
 0x28b   :  { %421 = dma.done.wait [#allocation10], 256  }
 0x28c   :  { %422 = vsyncadd [#allocation10], 4294967040 }
 0x28d   :  { %262 = vsyncpa [#allocation3], 1 }
 0x28e   :  { %263 = vsyncpa [#allocation6], 1 }
 0x28f   :  { %264 = vsyncpa [#allocation4], 1 }
 0x290   :  { %265 = vsyncpa [#allocation10], 1 }

</bundles_post_ra>
